<compile_context>
chip_gen: v6e
topology: v6e:2x2x1
jax: 0.10.0
libtpu: 0.0.40
codegen_flags: <defaults>
</compile_context>

<pallas_src>
import functools
import math

import jax
import jax.numpy as jnp
from jax.experimental import pallas as pl
from jax.experimental.pallas import tpu as pltpu


# ----------------------------------------------------------------------------
# Kernel: one batch-block per grid step, all heads fused.
# ----------------------------------------------------------------------------
def self_attention_kernel(x_ref, wqkv_ref, bqkv_ref, wo_ref, bo_ref, o_ref,
                          *, num_heads, hidden_dim):
    """Refs:
      x_ref    : (block_b, S, D_in)      activations (bf16 or f32 MXU operands)
      wqkv_ref : (D_in, P3)              fused [Wq*scale | Wk | Wv]^T, zero-padded
      bqkv_ref : (1, P3)                 fused biases (fp32; scale folded into bq)
      wo_ref   : (H, H)                  output projection (x @ Wo^T form)
      bo_ref   : (1, H)                  output bias (fp32)
      o_ref    : (block_b, S, H)         fp32 output, written exactly once
    """
    bb, s, d_in = x_ref.shape
    H = hidden_dim
    nh = num_heads
    hd = H // nh
    mm = x_ref.dtype                      # MXU operand dtype (bf16 default)

    # Flatten (block_b, S) onto the MXU M dimension (leading-dim reshape only).
    x2 = x_ref[...].reshape(bb * s, d_in)

    # One fused, lane-dense QKV projection (fp32 accumulate + fp32 bias).
    qkv = jnp.dot(x2, wqkv_ref[...],
                  preferred_element_type=jnp.float32) + bqkv_ref[...]
    q = qkv[:, 0:H]                       # scale already folded into Wq/bq
    k = qkv[:, H:2 * H]
    v = qkv[:, 2 * H:3 * H]

    # Per-head attention, unrolled (nh is small and static).  The contraction
    # width is inherently head_dim; everything around it stays fused.
    heads = []
    for h in range(nh):
        lo, hi = h * hd, (h + 1) * hd
        qh = q[:, lo:hi].reshape(bb, s, hd).astype(mm)
        kh = k[:, lo:hi].reshape(bb, s, hd).astype(mm)
        vh = v[:, lo:hi].reshape(bb, s, hd).astype(mm)

        # Scores without a materialized k.T; softmax stays fp32.
        sc = jnp.einsum("bqd,bkd->bqk", qh, kh,
                        preferred_element_type=jnp.float32)
        sc = sc - jnp.max(sc, axis=-1, keepdims=True)
        p = jnp.exp(sc)
        p = p * pl.reciprocal(jnp.sum(p, axis=-1, keepdims=True), approx=True)

        ph = jnp.einsum("bqk,bkd->bqd", p.astype(mm), vh,
                        preferred_element_type=jnp.float32)      # (bb, s, hd)
        heads.append(ph.reshape(bb * s, hd))

    # Heads concatenated on the lane axis -> single output projection, K = H.
    head_cat = jnp.concatenate(heads, axis=-1)                   # (bb*s, H)
    out = jnp.dot(head_cat.astype(mm), wo_ref[...],
                  preferred_element_type=jnp.float32) + bo_ref[...]

    # Single store per batch block (no resident-output accumulation).
    o_ref[...] = out.reshape(bb, s, H)


# ----------------------------------------------------------------------------
# Wrapper helpers
# ----------------------------------------------------------------------------
def _round_up(x, m):
    return ((x + m - 1) // m) * m


def _num_tensorcores():
    """Best-effort TensorCores-per-chip probe (v7x = 2, v5e/v6e = 1)."""
    try:
        dev = jax.devices()[0]
        n = getattr(dev, "num_cores", None)
        if isinstance(n, int) and n > 0:
            return n
        kind = str(getattr(dev, "device_kind", "")).lower()
        if ("7x" in kind or "v7" in kind) and "v5" not in kind and "v6" not in kind:
            return 2
    except Exception:
        pass
    return 1


def _pick_block_b(B, S, num_heads, *, target_rows=1024, min_steps=1,
                  score_budget_bytes=24 << 20):
    """Largest divisor of B such that block_b*S fills the MXU M dim without
    blowing the VMEM budget for the live fp32 score matrix.  >=2 grid steps
    along the parallel axis are requested only when min_steps > 1 (v7x)."""
    candidates = [d for d in range(1, B + 1)
                  if B % d == 0
                  and d * S <= target_rows
                  and d * num_heads * S * S * 4 <= score_budget_bytes]
    if not candidates:
        return 1
    ok = [d for d in candidates if B // d >= min_steps]
    return max(ok) if ok else max(candidates)


def self_attention_pallas(x, params, num_heads, *, block_b=None,
                          mm_dtype=jnp.bfloat16):
    """x: (B, S, D_in) fp32 -> (B, S, hidden_dim) fp32."""
    B, S, D_in = x.shape
    H = params["wq"].shape[0]               # torch Linear weight: (out, in)
    hd = H // num_heads
    scale = 1.0 / math.sqrt(float(hd))
    P3 = max(_round_up(3 * H, 128), 128)    # lane-dense fused QKV width

    if block_b is None:
        block_b = _pick_block_b(B, S, num_heads, min_steps=_num_tensorcores())
    assert B % block_b == 0

    # --- wrapper-side glue (traced once by XLA, not in the kernel) ----------
    # Fused x @ [Wq*scale | Wk | Wv]^T layout, zero-padded to a 128 multiple.
    wqkv = jnp.concatenate(
        [params["wq"] * scale, params["wk"], params["wv"]], axis=0)   # (3H, D_in)
    wqkv_pad = jnp.pad(wqkv.T, ((0, 0), (0, P3 - 3 * H)))             # (D_in, P3)
    bqkv = jnp.concatenate(
        [params["bq"] * scale, params["bk"], params["bv"]])           # (3H,)
    bqkv_pad = jnp.pad(bqkv, (0, P3 - 3 * H)).reshape(1, P3)          # fp32
    woT = params["wo"].T                                              # (H, H)
    bo2 = params["bo"].reshape(1, H)                                  # fp32

    # MXU operand dtype (bf16 default, incl. v5e); biases/softmax/accum stay fp32.
    x_in = x.astype(mm_dtype)
    wqkv_pad = wqkv_pad.astype(mm_dtype)
    woT = woT.astype(mm_dtype)

    grid = (B // block_b,)

    flops = int(2 * B * S * D_in * 3 * H            # fused QKV projection
                + 4 * B * num_heads * S * S * hd    # scores + PV
                + 2 * B * S * H * H)                # output projection
    transcendentals = int(B * num_heads * S * S)    # exp
    bytes_accessed = int(B * S * D_in * x_in.dtype.itemsize
                         + wqkv_pad.size * wqkv_pad.dtype.itemsize
                         + woT.size * woT.dtype.itemsize
                         + bqkv_pad.size * 4 + bo2.size * 4
                         + B * S * H * 4)

    kernel = functools.partial(self_attention_kernel,
                               num_heads=num_heads, hidden_dim=H)

    out = pl.pallas_call(
        kernel,
        out_shape=jax.ShapeDtypeStruct((B, S, H), jnp.float32),
        grid_spec=pltpu.PrefetchScalarGridSpec(
            num_scalar_prefetch=0,
            grid=grid,
            in_specs=[
                pl.BlockSpec((block_b, S, D_in), lambda b: (b, 0, 0)),   # x
                pl.BlockSpec((D_in, P3),         lambda b: (0, 0)),      # Wqkv (invariant)
                pl.BlockSpec((1, P3),            lambda b: (0, 0)),      # bqkv
                pl.BlockSpec((H, H),             lambda b: (0, 0)),      # Wo^T
                pl.BlockSpec((1, H),             lambda b: (0, 0)),      # bo
            ],
            out_specs=pl.BlockSpec((block_b, S, H), lambda b: (b, 0, 0)),
        ),
        compiler_params=pltpu.CompilerParams(
            dimension_semantics=("parallel",)),
        cost_estimate=pl.CostEstimate(flops=flops,
                                      transcendentals=transcendentals,
                                      bytes_accessed=bytes_accessed),
    )(x_in, wqkv_pad, bqkv_pad, woT, bo2)

    return out


# ----------------------------------------------------------------------------
# Attention module wrapper (mirrors PyTorch `Attention.forward`)
# ----------------------------------------------------------------------------
def attention_forward(obs, actions, params, num_heads, *,
                      block_b=None, mm_dtype=jnp.bfloat16):
    # TODO(synk): `self.pos_encoding_obs` is never defined in the reference
    # module's __init__; treated as identity here rather than inventing one.
    del actions                              # unused in the reference forward
    return self_attention_pallas(obs, params, num_heads,
                                 block_b=block_b, mm_dtype=mm_dtype)


def init_params(key, input_dim, hidden_dim):
    """Deterministic init mimicking torch.nn.Linear (uniform +/- 1/sqrt(fan_in))."""
    ks = jax.random.split(key, 8)
    def lin(kw, kb, fan_in, fan_out):
        bound = 1.0 / math.sqrt(fan_in)
        w = jax.random.uniform(kw, (fan_out, fan_in), jnp.float32, -bound, bound)
        b = jax.random.uniform(kb, (fan_out,), jnp.float32, -bound, bound)
        return w, b
    wq, bq = lin(ks[0], ks[1], input_dim, hidden_dim)
    wk, bk = lin(ks[2], ks[3], input_dim, hidden_dim)
    wv, bv = lin(ks[4], ks[5], input_dim, hidden_dim)
    wo, bo = lin(ks[6], ks[7], hidden_dim, hidden_dim)
    return dict(wq=wq, bq=bq, wk=wk, bk=bk, wv=wv, bv=bv, wo=wo, bo=bo)


def attention_reference(obs, params, num_heads):
    """Pure-JAX reference replicating the PyTorch math."""
    B, S, _ = obs.shape
    H = params["wq"].shape[0]
    hd = H // num_heads
    q = obs @ params["wq"].T + params["bq"]
    k = obs @ params["wk"].T + params["bk"]
    v = obs @ params["wv"].T + params["bv"]
    q = q.reshape(B, S, num_heads, hd).transpose(0, 2, 1, 3)
    k = k.reshape(B, S, num_heads, hd).transpose(0, 2, 1, 3)
    v = v.reshape(B, S, num_heads, hd).transpose(0, 2, 1, 3)
    scores = jnp.einsum("bhqd,bhkd->bhqk", q, k) / math.sqrt(hd)
    scores = jax.nn.softmax(scores, axis=-1)
    wv = jnp.einsum("bhqk,bhkd->bhqd", scores, v)
    wv = wv.transpose(0, 2, 1, 3).reshape(B, S, H)
    return wv @ params["wo"].T + params["bo"]


if __name__ == "__main__":
    # Small shapes consistent with the module: obs_dim=16, hidden_dim=32, nhead=2
    B, S, OBS_DIM, ACT_DIM, HIDDEN, NHEAD = 2, 8, 16, 4, 32, 2

    key = jax.random.PRNGKey(0)
    k_obs, k_act, k_par = jax.random.split(key, 3)
    obs = jax.random.normal(k_obs, (B, S, OBS_DIM), jnp.float32)
    actions = jax.random.normal(k_act, (B, S, ACT_DIM), jnp.float32)
    params = init_params(k_par, OBS_DIM, HIDDEN)

    ref = attention_reference(obs, params, NHEAD)

    # Default fast path: bf16 MXU operands (all generations), fp32 softmax/accum.
    out_bf16 = jax.block_until_ready(
        attention_forward(obs, actions, params, NHEAD))
    assert out_bf16.shape == (B, S, HIDDEN)
    assert jnp.allclose(out_bf16, ref, atol=5e-2, rtol=5e-2), "bf16 mismatch vs reference"

    # fp32 MXU-operand path (bit-closer parity check).
    out_f32 = jax.block_until_ready(
        attention_forward(obs, actions, params, NHEAD, mm_dtype=jnp.float32))
    assert out_f32.shape == (B, S, HIDDEN)
    assert jnp.allclose(out_f32, ref, atol=1e-2, rtol=1e-2), "fp32 mismatch vs reference"

    print("KERNEL_OK")
</pallas_src>

<mosaic_0001>
module attributes {stable_mosaic.version = 11 : i64} {
  func.func @self_attention_kernel(%arg0: i32, %arg1: memref<2x8x16xbf16, #tpu.memory_space<vmem>>, %arg2: memref<16x128xbf16, #tpu.memory_space<vmem>>, %arg3: memref<1x128xf32, #tpu.memory_space<vmem>>, %arg4: memref<32x32xbf16, #tpu.memory_space<vmem>>, %arg5: memref<1x32xf32, #tpu.memory_space<vmem>>, %arg6: memref<2x8x32xf32, #tpu.memory_space<vmem>>) attributes {dimension_semantics = [#tpu.dimension_semantics<parallel>], iteration_bounds = array<i64: 1>, scalar_prefetch = 0 : i64, scratch_operands = 0 : i64, tpu.core_type = #tpu.core_type<tc>, window_params = [{transform_indices = @transform_0, window_bounds = array<i64: 2, 8, 16>}, {pipeline_mode = #tpu.pipeline_mode<synchronous>, transform_indices = @transform_1, window_bounds = array<i64: 16, 128>}, {pipeline_mode = #tpu.pipeline_mode<synchronous>, transform_indices = @transform_2, window_bounds = array<i64: 1, 128>}, {pipeline_mode = #tpu.pipeline_mode<synchronous>, transform_indices = @transform_3, window_bounds = array<i64: 32, 32>}, {pipeline_mode = #tpu.pipeline_mode<synchronous>, transform_indices = @transform_4, window_bounds = array<i64: 1, 32>}, {transform_indices = @transform_5, window_bounds = array<i64: 2, 8, 32>}]} {
    %c0 = arith.constant 0 : index
    %c0_0 = arith.constant 0 : index
    %c0_1 = arith.constant 0 : index
    %0 = vector.load %arg1[%c0, %c0_0, %c0_1] : memref<2x8x16xbf16, #tpu.memory_space<vmem>>, vector<2x8x16xbf16>
    %1 = vector.shape_cast %0 : vector<2x8x16xbf16> to vector<16x16xbf16>
    %c0_2 = arith.constant 0 : index
    %c0_3 = arith.constant 0 : index
    %2 = vector.load %arg2[%c0_2, %c0_3] : memref<16x128xbf16, #tpu.memory_space<vmem>>, vector<16x128xbf16>
    %cst = arith.constant dense<0.000000e+00> : vector<16x128xf32>
    %3 = tpu.matmul %1, %2, %cst {dimension_numbers = #tpu.dot_dimension_numbers<[1], [0], [0], [1], [0, 0, 1, 1], [], []>} : vector<16x16xbf16>, vector<16x128xbf16>, vector<16x128xf32> -> vector<16x128xf32>
    %c0_4 = arith.constant 0 : index
    %c0_5 = arith.constant 0 : index
    %4 = vector.load %arg3[%c0_4, %c0_5] : memref<1x128xf32, #tpu.memory_space<vmem>>, vector<1x128xf32>
    %5 = vector.broadcast %4 : vector<1x128xf32> to vector<16x128xf32>
    %6 = arith.addf %3, %5 : vector<16x128xf32>
    %7 = vector.extract_strided_slice %6 {offsets = [0, 0], sizes = [16, 32], strides = [1, 1]} : vector<16x128xf32> to vector<16x32xf32>
    %8 = vector.extract_strided_slice %6 {offsets = [0, 32], sizes = [16, 32], strides = [1, 1]} : vector<16x128xf32> to vector<16x32xf32>
    %9 = vector.extract_strided_slice %6 {offsets = [0, 64], sizes = [16, 32], strides = [1, 1]} : vector<16x128xf32> to vector<16x32xf32>
    %10 = vector.extract_strided_slice %7 {offsets = [0, 0], sizes = [16, 16], strides = [1, 1]} : vector<16x32xf32> to vector<16x16xf32>
    %11 = vector.shape_cast %10 : vector<16x16xf32> to vector<2x8x16xf32>
    %12 = arith.truncf %11 : vector<2x8x16xf32> to vector<2x8x16xbf16>
    %13 = vector.extract_strided_slice %8 {offsets = [0, 0], sizes = [16, 16], strides = [1, 1]} : vector<16x32xf32> to vector<16x16xf32>
    %14 = vector.shape_cast %13 : vector<16x16xf32> to vector<2x8x16xf32>
    %15 = arith.truncf %14 : vector<2x8x16xf32> to vector<2x8x16xbf16>
    %16 = vector.extract_strided_slice %9 {offsets = [0, 0], sizes = [16, 16], strides = [1, 1]} : vector<16x32xf32> to vector<16x16xf32>
    %17 = vector.shape_cast %16 : vector<16x16xf32> to vector<2x8x16xf32>
    %18 = arith.truncf %17 : vector<2x8x16xf32> to vector<2x8x16xbf16>
    "tpu.trace_start"() <{level = 10 : i32, message = "bqd,bkd->bqk"}> : () -> ()
    %cst_6 = arith.constant dense<0.000000e+00> : vector<2x8x8xf32>
    %19 = tpu.matmul %12, %15, %cst_6 {dimension_numbers = #tpu.dot_dimension_numbers<[2], [2], [1], [1], [0, 0, 0, 1, 1, 1], [0], [0]>} : vector<2x8x16xbf16>, vector<2x8x16xbf16>, vector<2x8x8xf32> -> vector<2x8x8xf32>
    "tpu.trace_stop"() : () -> ()
    %cst_7 = arith.constant dense<0xFF800000> : vector<2x8xf32>
    %20 = vector.multi_reduction <maximumf>, %19, %cst_7 [2] : vector<2x8x8xf32> to vector<2x8xf32>
    %21 = vector.shape_cast %20 : vector<2x8xf32> to vector<2x8x1xf32>
    %22 = vector.broadcast %21 : vector<2x8x1xf32> to vector<2x8x8xf32>
    %23 = arith.subf %19, %22 : vector<2x8x8xf32>
    %24 = math.exp %23 : vector<2x8x8xf32>
    %cst_8 = arith.constant dense<0.000000e+00> : vector<2x8xf32>
    %25 = vector.multi_reduction <add>, %24, %cst_8 [2] : vector<2x8x8xf32> to vector<2x8xf32>
    %26 = vector.shape_cast %25 : vector<2x8xf32> to vector<2x8x1xf32>
    %27 = tpu.reciprocal %26 {approx = true} : vector<2x8x1xf32> -> vector<2x8x1xf32>
    %28 = vector.broadcast %27 : vector<2x8x1xf32> to vector<2x8x8xf32>
    %29 = arith.mulf %24, %28 : vector<2x8x8xf32>
    %30 = arith.truncf %29 : vector<2x8x8xf32> to vector<2x8x8xbf16>
    "tpu.trace_start"() <{level = 10 : i32, message = "bqk,bkd->bqd"}> : () -> ()
    %cst_9 = arith.constant dense<0.000000e+00> : vector<2x8x16xf32>
    %31 = tpu.matmul %30, %18, %cst_9 {dimension_numbers = #tpu.dot_dimension_numbers<[2], [1], [1], [2], [0, 0, 0, 1, 1, 2], [0], [0]>} : vector<2x8x8xbf16>, vector<2x8x16xbf16>, vector<2x8x16xf32> -> vector<2x8x16xf32>
    "tpu.trace_stop"() : () -> ()
    %32 = vector.shape_cast %31 : vector<2x8x16xf32> to vector<16x16xf32>
    %33 = vector.extract_strided_slice %7 {offsets = [0, 16], sizes = [16, 16], strides = [1, 1]} : vector<16x32xf32> to vector<16x16xf32>
    %34 = vector.shape_cast %33 : vector<16x16xf32> to vector<2x8x16xf32>
    %35 = arith.truncf %34 : vector<2x8x16xf32> to vector<2x8x16xbf16>
    %36 = vector.extract_strided_slice %8 {offsets = [0, 16], sizes = [16, 16], strides = [1, 1]} : vector<16x32xf32> to vector<16x16xf32>
    %37 = vector.shape_cast %36 : vector<16x16xf32> to vector<2x8x16xf32>
    %38 = arith.truncf %37 : vector<2x8x16xf32> to vector<2x8x16xbf16>
    %39 = vector.extract_strided_slice %9 {offsets = [0, 16], sizes = [16, 16], strides = [1, 1]} : vector<16x32xf32> to vector<16x16xf32>
    %40 = vector.shape_cast %39 : vector<16x16xf32> to vector<2x8x16xf32>
    %41 = arith.truncf %40 : vector<2x8x16xf32> to vector<2x8x16xbf16>
    "tpu.trace_start"() <{level = 10 : i32, message = "bqd,bkd->bqk"}> : () -> ()
    %cst_10 = arith.constant dense<0.000000e+00> : vector<2x8x8xf32>
    %42 = tpu.matmul %35, %38, %cst_10 {dimension_numbers = #tpu.dot_dimension_numbers<[2], [2], [1], [1], [0, 0, 0, 1, 1, 1], [0], [0]>} : vector<2x8x16xbf16>, vector<2x8x16xbf16>, vector<2x8x8xf32> -> vector<2x8x8xf32>
    "tpu.trace_stop"() : () -> ()
    %cst_11 = arith.constant dense<0xFF800000> : vector<2x8xf32>
    %43 = vector.multi_reduction <maximumf>, %42, %cst_11 [2] : vector<2x8x8xf32> to vector<2x8xf32>
    %44 = vector.shape_cast %43 : vector<2x8xf32> to vector<2x8x1xf32>
    %45 = vector.broadcast %44 : vector<2x8x1xf32> to vector<2x8x8xf32>
    %46 = arith.subf %42, %45 : vector<2x8x8xf32>
    %47 = math.exp %46 : vector<2x8x8xf32>
    %cst_12 = arith.constant dense<0.000000e+00> : vector<2x8xf32>
    %48 = vector.multi_reduction <add>, %47, %cst_12 [2] : vector<2x8x8xf32> to vector<2x8xf32>
    %49 = vector.shape_cast %48 : vector<2x8xf32> to vector<2x8x1xf32>
    %50 = tpu.reciprocal %49 {approx = true} : vector<2x8x1xf32> -> vector<2x8x1xf32>
    %51 = vector.broadcast %50 : vector<2x8x1xf32> to vector<2x8x8xf32>
    %52 = arith.mulf %47, %51 : vector<2x8x8xf32>
    %53 = arith.truncf %52 : vector<2x8x8xf32> to vector<2x8x8xbf16>
    "tpu.trace_start"() <{level = 10 : i32, message = "bqk,bkd->bqd"}> : () -> ()
    %cst_13 = arith.constant dense<0.000000e+00> : vector<2x8x16xf32>
    %54 = tpu.matmul %53, %41, %cst_13 {dimension_numbers = #tpu.dot_dimension_numbers<[2], [1], [1], [2], [0, 0, 0, 1, 1, 2], [0], [0]>} : vector<2x8x8xbf16>, vector<2x8x16xbf16>, vector<2x8x16xf32> -> vector<2x8x16xf32>
    "tpu.trace_stop"() : () -> ()
    %55 = vector.shape_cast %54 : vector<2x8x16xf32> to vector<16x16xf32>
    %56 = tpu.concatenate %32, %55 in 1 : vector<16x16xf32>, vector<16x16xf32> -> vector<16x32xf32>
    %57 = arith.truncf %56 : vector<16x32xf32> to vector<16x32xbf16>
    %c0_14 = arith.constant 0 : index
    %c0_15 = arith.constant 0 : index
    %58 = vector.load %arg4[%c0_14, %c0_15] : memref<32x32xbf16, #tpu.memory_space<vmem>>, vector<32x32xbf16>
    %cst_16 = arith.constant dense<0.000000e+00> : vector<16x32xf32>
    %59 = tpu.matmul %57, %58, %cst_16 {dimension_numbers = #tpu.dot_dimension_numbers<[1], [0], [0], [1], [0, 0, 1, 1], [], []>} : vector<16x32xbf16>, vector<32x32xbf16>, vector<16x32xf32> -> vector<16x32xf32>
    %c0_17 = arith.constant 0 : index
    %c0_18 = arith.constant 0 : index
    %60 = vector.load %arg5[%c0_17, %c0_18] : memref<1x32xf32, #tpu.memory_space<vmem>>, vector<1x32xf32>
    %61 = vector.broadcast %60 : vector<1x32xf32> to vector<16x32xf32>
    %62 = arith.addf %59, %61 : vector<16x32xf32>
    %63 = vector.shape_cast %62 : vector<16x32xf32> to vector<2x8x32xf32>
    %c0_19 = arith.constant 0 : index
    %c0_20 = arith.constant 0 : index
    %c0_21 = arith.constant 0 : index
    %64 = vector.load %arg6[%c0_19, %c0_20, %c0_21] : memref<2x8x32xf32, #tpu.memory_space<vmem>>, vector<2x8x32xf32>
    tpu.vector_store %arg6[%c0_19, %c0_20, %c0_21], %63 {strides = array<i32>} : memref<2x8x32xf32, #tpu.memory_space<vmem>>, vector<2x8x32xf32>,
    return
  }
  func.func @transform_0(%arg0: i32) -> (i32, i32, i32) {
    %c0_i32 = arith.constant 0 : i32
    %c0_i32_0 = arith.constant 0 : i32
    %c0_i32_1 = arith.constant 0 : i32
    return %arg0, %c0_i32, %c0_i32_0 : i32, i32, i32
  }
  func.func @transform_1(%arg0: i32) -> (i32, i32) {
    %c0_i32 = arith.constant 0 : i32
    %c0_i32_0 = arith.constant 0 : i32
    %c0_i32_1 = arith.constant 0 : i32
    return %c0_i32, %c0_i32_0 : i32, i32
  }
  func.func @transform_2(%arg0: i32) -> (i32, i32) {
    %c0_i32 = arith.constant 0 : i32
    %c0_i32_0 = arith.constant 0 : i32
    %c0_i32_1 = arith.constant 0 : i32
    return %c0_i32, %c0_i32_0 : i32, i32
  }
  func.func @transform_3(%arg0: i32) -> (i32, i32) {
    %c0_i32 = arith.constant 0 : i32
    %c0_i32_0 = arith.constant 0 : i32
    %c0_i32_1 = arith.constant 0 : i32
    return %c0_i32, %c0_i32_0 : i32, i32
  }
  func.func @transform_4(%arg0: i32) -> (i32, i32) {
    %c0_i32 = arith.constant 0 : i32
    %c0_i32_0 = arith.constant 0 : i32
    %c0_i32_1 = arith.constant 0 : i32
    return %c0_i32, %c0_i32_0 : i32, i32
  }
  func.func @transform_5(%arg0: i32) -> (i32, i32, i32) {
    %c0_i32 = arith.constant 0 : i32
    %c0_i32_0 = arith.constant 0 : i32
    %c0_i32_1 = arith.constant 0 : i32
    return %arg0, %c0_i32, %c0_i32_0 : i32, i32, i32
  }
}

</mosaic_0001>

<bundles_post_ra>
// kernel: tpu_custom_call.1
= control target key start
LH: loop header
LB: loop body
LE: loop exit
PB: predicated region body
PF: predicated region fallthrough
CT: control target
= control target key end

     0   :  { %10 = vsyncpa [#allocation3], 0  ;;  %s1047_s0 = inlined_call_operand.hbm [shape: bf16[2,8,16], index: 0, kind: input, shape index: {}]   ;;  %s1048_s1 = inlined_call_operand.hbm [shape: bf16[16,128], index: 1, kind: input, shape index: {}]   ;;  %s1049_s2 = inlined_call_operand.vmem [shape: f32[1,128], index: 2, kind: input, shape index: {}]   ;;  %s1050_s3 = inlined_call_operand.hbm [shape: bf16[32,32], index: 3, kind: input, shape index: {}]   ;;  %s1051_s4 = inlined_call_operand.vmem [shape: f32[1,32], index: 4, kind: input, shape index: {}]   ;;  %s1052_s5 = inlined_call_operand.hbm [shape: f32[2,8,32], index: 5, kind: output, shape index: {}]  }
   0x1   :  { %11 = vsyncpa [#allocation6], 0 }
   0x2   :  { %12 = vsyncpa [#allocation4], 0  ;;  %s896_s18 = smov [#allocation5]   ;;  %s897_s20 = smov [#allocation2]  }
   0x3   :  { %s30_s19 = sshll.u32 %s896_s18, 4  ;;  %s18_s21 = sshll.u32 %s897_s20, 4  ;;  %s31_s19 = int_to_ptr.vmem [resolvable:$true] %s30_s19  ;;  %s19_s21 = int_to_ptr.vmem [resolvable:$true] %s18_s21 }
   0x4   :  { %s818_s22 = scalar_lea.vmem %s31_s19, 128  ;;  %p823_p1 = scmp.lt.s32.totalorder %s31_s19, %s31_s19 }
   0x5   :  { %p819_p0 = scmp.ne.s32.totalorder %s31_s19, %s818_s22  ;;  %p824_p2 = scmp.lt.s32.totalorder %s818_s22, %s818_s22 }
   0x7   :  { %p825_p3 = por %p824_p2, %p823_p1 }
   0x9   :  { %p826_p4 = pnand %p825_p3, %p819_p0 }
   0xb   :  { %829 = shalt.err (!%p826_p4)
}
   0xc   :  { %s898_s23 = smov 64   ;;  %s899_s24 = smov 4  }
   0xd   :  { %36 = dma.hbm_to_vmem [thread:$0]  %s1048_s1, 128, %s31_s19, [#allocation6], %s898_s23, %s898_s23, %s899_s24  }
   0xe   :  { %s838_s27 = scalar_lea.vmem %s19_s21, 128  ;;  %p843_p6 = scmp.lt.s32.totalorder %s19_s21, %s19_s21 }
   0xf   :  { %p839_p5 = scmp.ne.s32.totalorder %s19_s21, %s838_s27  ;;  %p844_p7 = scmp.lt.s32.totalorder %s838_s27, %s838_s27 }
  0x11   :  { %p845_p8 = por %p844_p7, %p843_p6 }
  0x13   :  { %p846_p9 = pnand %p845_p8, %p839_p5 }
  0x15   :  { %849 = shalt.err (!%p846_p9)
}
  0x16   :  { %24 = dma.hbm_to_vmem [thread:$0]  %s1047_s0, 128, %s19_s21, [#allocation3], %s898_s23, %s898_s23, %s899_s24  }
  0x17   :  { %s900_s30 = smov [#allocation7]  }
  0x18   :  { %s44_s6 = sshll.u32 %s900_s30, 4  ;;  %s45_s6 = int_to_ptr.vmem [resolvable:$true] %s44_s6 }
  0x19   :  { %s858_s7 = scalar_lea.vmem %s45_s6, 256  ;;  %p863_p11 = scmp.lt.s32.totalorder %s45_s6, %s45_s6 }
  0x1a   :  { %p859_p10 = scmp.ne.s32.totalorder %s45_s6, %s858_s7  ;;  %p864_p12 = scmp.lt.s32.totalorder %s858_s7, %s858_s7 }
  0x1c   :  { %p865_p13 = por %p864_p12, %p863_p11 }
  0x1e   :  { %p866_p0 = pnand %p865_p13, %p859_p10 }
  0x20   :  { %869 = shalt.err (!%p866_p0)
}
  0x21   :  { %50 = dma.hbm_to_vmem [thread:$0]  %s1050_s3, 256, %s45_s6, [#allocation6], %s898_s23, %s898_s23, %s899_s24  }
  0x22   :  { %890 = dma.done.wait [#allocation3], 128  }
  0x23   :  { %891 = vsyncadd [#allocation3], 4294967168 }
  0x24   :  { %892 = dma.done.wait [#allocation6], 384  }
  0x25   :  { %893 = vsyncadd [#allocation6], 4294966912  ;;  %v901_v0 = vmov 0.0   ;;  %vm902_vm0 = vmmov 0   ;;  %v790_v1 = vld [vmem:[#allocation5] sm:$0xff]   ;;  %v791_v2 = vld [vmem:[#allocation2] sm:$0xff]  }
  0x26   :  { %708 = vmatprep.subr.bf16.mxu0 %v901_v0  ;;  %710 = vmatprep.mubr.msk.bf16.mxu0 %vm902_vm0, %v901_v0  ;;  %vm85_vm1 = vcmask 130048   ;;  %v671_v3 = vld [vmem:[%s1049_s2] ss:$0 sm:$0xff]  ;;  %s903_s9 = smov 96   ;;  %vm230_vm2 = vcmask 64512   ;;  %s904_s2 = smov 80  }
  0x27   :  { %714 = vmatprep.subr.bf16.mxu1 %v901_v0  ;;  %716 = vmatprep.mubr.msk.bf16.mxu1 %vm902_vm0, %v901_v0  ;;  %vm260_vm3 = vcmask 1043456   ;;  %s905_s10 = smov 112   ;;  %s906_s11 = smov 48   ;;  %vm606_vm4 = vcmask 261120  }
  0x28   :  { %709 = vmatpush3.bf16.msra.mxu0 %v790_v1  ;;  %s907_s12 = smov 16   ;;  %s908_s15 = smov [#allocation8]  }
  0x29   :  { %720 = vmatprep.subr.bf16.mxu0 %v901_v0  ;;  %s658_s16 = sshll.u32 %s908_s15, 4  ;;  %s659_s16 = int_to_ptr.vmem [resolvable:$true] %s658_s16 }
  0x2a   :  { %s870_s17 = scalar_lea.vmem %s659_s16, 256  ;;  %p875_p2 = scmp.lt.s32.totalorder %s659_s16, %s659_s16 }
  0x2b   :  { %711 = vmatmul.mubr.msk.bf16.vlgmr.msra.gmra.mxu0 %vm85_vm1, %v791_v2  ;;  %p871_p1 = scmp.ne.s32.totalorder %s659_s16, %s870_s17  ;;  %p876_p3 = scmp.lt.s32.totalorder %s870_s17, %s870_s17 }
  0x2c   :  { %722 = vmatprep.mubr.msk.bf16.mxu0 %vm902_vm0, %v901_v0 }
  0x2d   :  { %p877_p4 = por %p876_p3, %p875_p2 }
  0x2f   :  { %p878_p5 = pnand %p877_p4, %p871_p1 }
  0xeb   :  { %v123_v4 = vpop.f32.mrf.mxu0 }
  0xec   :  { %v124_v5 = vadd.f32 %v671_v3, %v123_v4 }
  0xed   :  { %v712_v6 = vpop.f32.mrf.mxu0 }
  0xee   :  { %v969_v7 = vpack.c.bf16 %v124_v5, %v124_v5 }
  0xef   :  { %v126_v8 = vpop.f32.mrf.mxu0 }
  0xf0   :  { %v127_v9 = vadd.f32 %v671_v3, %v126_v8  ;;  %133 = vrot.lane.b32.xlu0 %v969_v7, %s903_s9 }
  0xf1   :  { %v713_v10 = vpop.f32.mrf.mxu0 }
  0xf2   :  { %v972_v11 = vpack.c.bf16 %v127_v9, %v127_v9 }
  0xf4   :  { %182 = vrot.lane.b32.xlu0 %v972_v11, %s903_s9 }
 0x162   :  { %v134_v12 = vpop.permute.xlu0 %133 }
 0x163   :  { %v139_v13 = vsel %vm85_vm1, %v134_v12, 0 }
 0x164   :  { %715 = vmatpush3.bf16.xpose.msra.mxu1 %v139_v13 }
 0x165   :  { %726 = vmatprep.subr.bf16.mxu1 %v901_v0 }
 0x166   :  { %v183_v14 = vpop.permute.xlu0 %182 }
 0x167   :  { %v188_v15 = vsel %vm85_vm1, %v183_v14, 0 }
 0x168   :  { %721 = vmatpush3.bf16.xpose.msra.mxu0 %v188_v15 }
 0x169   :  { %732 = vmatprep.subr.bf16.mxu0 %v901_v0 }
 0x16b   :  { %717 = vmatmul.mubr.msk.bf16.vlgmr.msra.gmra.mxu1 %vm85_vm1, %v969_v7 }
 0x16c   :  { %728 = vmatprep.mubr.msk.bf16.mxu1 %vm902_vm0, %v901_v0 }
 0x16f   :  { %723 = vmatmul.mubr.msk.bf16.vlgmr.msra.gmra.mxu0 %vm85_vm1, %v972_v11 }
 0x170   :  { %734 = vmatprep.mubr.msk.bf16.mxu0 %vm902_vm0, %v901_v0 }
 0x22b   :  { %v175_v16 = vpop.f32.mrf.mxu1 }
 0x22c   :  { %v231_v17 = vsel %vm230_vm2, %v175_v16, -inf }
 0x22d   :  { %232 = vmax.xlane.f32.xlu1 %v231_v17  ;;  %v718_v18 = vpop.f32.mrf.mxu1 }
 0x22f   :  { %v178_v19 = vpop.f32.mrf.mxu1  ;;  %v224_v20 = vpop.f32.mrf.mxu0 }
 0x230   :  { %v234_v21 = vsel %vm230_vm2, %v224_v20, -inf }
 0x231   :  { %v719_v22 = vpop.f32.mrf.mxu1  ;;  %235 = vmax.xlane.f32.xlu1 %v234_v21  ;;  %v724_v23 = vpop.f32.mrf.mxu0 }
 0x233   :  { %v227_v24 = vpop.f32.mrf.mxu0 }
 0x235   :  { %v725_v25 = vpop.f32.mrf.mxu0 }
 0x242   :  { %255 = vrot.lane.b32.xlu1 %v969_v7, %s898_s23 }
 0x246   :  { %304 = vrot.lane.b32.xlu1 %v972_v11, %s898_s23 }
 0x24a   :  { %354 = vrot.lane.b32.xlu1 %v969_v7, %s904_s2 }
 0x2b6   :  { %v233_v26 = vpop.xlane.xlu1 %232 }
 0x2b7   :  { %v237_v27 = vsub.f32 %v175_v16, %v233_v26 }
 0x2b9   :  { %v239_v28 = vmul.f32 1.442695, %v237_v27 }
 0x2ba   :  { %v236_v29 = vpop.xlane.xlu1 %235 }
 0x2bb   :  { %794 = vpow2.f32 %v239_v28  ;;  %v238_v30 = vsub.f32 %v224_v20, %v236_v29 }
 0x2bd   :  { %v241_v31 = vmul.f32 1.442695, %v238_v30 }
 0x2be   :  { %v256_v32 = vpop.permute.xlu1 %255 }
 0x2bf   :  { %796 = vpow2.f32 %v241_v31  ;;  %v262_v33 = vsel %vm260_vm3, %v256_v32, 0  ;;  %v792_v31 = vld [vmem:[#allocation7 + $0x8] sm:$0xff]   ;;  %v793_v32 = vld [vmem:[#allocation7] sm:$0xff]  }
 0x2c0   :  { %727 = vmatpush3.bf16.msra.mxu1 %v262_v33 }
 0x2c1   :  { %738 = vmatprep.subr.bf16.mxu1 %v901_v0 }
 0x2c2   :  { %v305_v34 = vpop.permute.xlu1 %304 }
 0x2c3   :  { %v310_v35 = vsel %vm260_vm3, %v305_v34, 0 }
 0x2c4   :  { %733 = vmatpush3.bf16.msra.mxu0 %v310_v35 }
 0x2c5   :  { %744 = vmatprep.subr.bf16.mxu0 %v901_v0 }
 0x2c6   :  { %v355_v40 = vpop.permute.xlu1 %354 }
 0x2c7   :  { %v360_v47 = vsel %vm85_vm1, %v355_v40, 0 }
 0x2c8   :  { %v795_v36 = vpop.eup %794 }
 0x2c9   :  { %v243_v37 = vsel %vm230_vm2, %v795_v36, 0.0 }
 0x2ca   :  { %244 = vadd.xlane.f32.xlu0 %v243_v37 }
 0x2cc   :  { %v797_v38 = vpop.eup %796 }
 0x2cd   :  { %v246_v39 = vsel %vm230_vm2, %v797_v38, 0.0 }
 0x2ce   :  { %247 = vadd.xlane.f32.xlu1 %v246_v39 }
 0x2df   :  { %404 = vrot.lane.b32.xlu1 %v972_v11, %s904_s2 }
 0x2e0   :  { %352 = vrot.lane.b32.xlu0 %v969_v7, %s905_s10 }
 0x2e3   :  { %402 = vrot.lane.b32.xlu1 %v972_v11, %s905_s10 }
 0x353   :  { %v245_v41 = vpop.xlane.xlu0 %244 }
 0x354   :  { %798 = vrcp.f32 %v245_v41 }
 0x357   :  { %v248_v42 = vpop.xlane.xlu1 %247  ;;  %v353_v52 = vpop.permute.xlu0 %352 }
 0x358   :  { %800 = vrcp.f32 %v248_v42 }
 0x35b   :  { %v405_v49 = vpop.permute.xlu1 %404 }
 0x35c   :  { %v410_v51 = vsel %vm85_vm1, %v405_v49, 0 }
 0x35f   :  { %v403_v53 = vpop.permute.xlu1 %402 }
 0x361   :  { %v799_v43 = vpop.eup %798 }
 0x362   :  { %v251_v44 = vmul.f32 %v799_v43, %v795_v36 }
 0x364   :  { %v253_v45 = vpack.c.bf16 %v251_v44, %v251_v44 }
 0x365   :  { %v801_v46 = vpop.eup %800 }
 0x366   :  { %729 = vmatmul.mubr.msk.bf16.vlgmr.msra.gmra.mxu1 %vm230_vm2, %v253_v45  ;;  %v252_v48 = vmul.f32 %v801_v46, %v797_v38 }
 0x367   :  { %739 = vmatpush3.bf16.xpose.msra.mxu1 %v360_v47  ;;  %740 = vmatprep.mubr.msk.bf16.mxu1 %vm902_vm0, %v901_v0  ;;  %v683_v47 = vld [vmem:[%s1051_s4] ss:$0 sm:$0xff] }
 0x368   :  { %v254_v50 = vpack.c.bf16 %v252_v48, %v252_v48  ;;  %750 = vmatprep.subr.bf16.mxu1 %v901_v0 }
 0x36a   :  { %735 = vmatmul.mubr.msk.bf16.vlgmr.msra.gmra.mxu0 %vm230_vm2, %v254_v50 }
 0x36b   :  { %745 = vmatpush3.bf16.xpose.msra.mxu0 %v410_v51  ;;  %746 = vmatprep.mubr.msk.bf16.mxu0 %vm902_vm0, %v901_v0 }
 0x36c   :  { %756 = vmatprep.subr.bf16.mxu0 %v901_v0 }
 0x36e   :  { %741 = vmatmul.mubr.msk.bf16.vlgmr.msra.gmra.mxu1 %vm85_vm1, %v353_v52 }
 0x36f   :  { %752 = vmatprep.mubr.msk.bf16.mxu1 %vm902_vm0, %v901_v0 }
 0x372   :  { %747 = vmatmul.mubr.msk.bf16.vlgmr.msra.gmra.mxu0 %vm85_vm1, %v403_v53 }
 0x373   :  { %758 = vmatprep.mubr.msk.bf16.mxu0 %vm902_vm0, %v901_v0 }
 0x426   :  { %v1019_v54 = vpop.f32.mrf.mxu1 }
 0x428   :  { %v730_v55 = vpop.f32.mrf.mxu1 }
 0x42a   :  { %v301_v56 = vpop.f32.mrf.mxu1  ;;  %v1021_v57 = vpop.f32.mrf.mxu0 }
 0x42c   :  { %v731_v58 = vpop.f32.mrf.mxu1  ;;  %v736_v59 = vpop.f32.mrf.mxu0 }
 0x42e   :  { %v349_v60 = vpop.f32.mrf.mxu0  ;;  %v396_v61 = vpop.f32.mrf.mxu1 }
 0x42f   :  { %v452_v62 = vsel %vm230_vm2, %v396_v61, -inf }
 0x430   :  { %453 = vmax.xlane.f32.xlu1 %v452_v62  ;;  %v737_v63 = vpop.f32.mrf.mxu0  ;;  %v742_v1 = vpop.f32.mrf.mxu1 }
 0x432   :  { %v399_v2 = vpop.f32.mrf.mxu1  ;;  %v446_v3 = vpop.f32.mrf.mxu0 }
 0x433   :  { %v455_v4 = vsel %vm230_vm2, %v446_v3, -inf }
 0x434   :  { %v743_v5 = vpop.f32.mrf.mxu1  ;;  %456 = vmax.xlane.f32.xlu0 %v455_v4  ;;  %v748_v6 = vpop.f32.mrf.mxu0 }
 0x436   :  { %v449_v8 = vpop.f32.mrf.mxu0 }
 0x438   :  { %v749_v9 = vpop.f32.mrf.mxu0 }
 0x44a   :  { %524 = vrot.lane.b32.xlu0 %v972_v11, %s906_s11 }
 0x4b9   :  { %v454_v10 = vpop.xlane.xlu1 %453 }
 0x4ba   :  { %v458_v12 = vsub.f32 %v396_v61, %v454_v10 }
 0x4bc   :  { %v460_v13 = vmul.f32 1.442695, %v458_v12 }
 0x4bd   :  { %v457_v14 = vpop.xlane.xlu0 %456 }
 0x4be   :  { %802 = vpow2.f32 %v460_v13  ;;  %v459_v15 = vsub.f32 %v446_v3, %v457_v14 }
 0x4c0   :  { %v462_v16 = vmul.f32 1.442695, %v459_v15 }
 0x4c1   :  { %v525_v17 = vpop.permute.xlu0 %524 }
 0x4c2   :  { %804 = vpow2.f32 %v462_v16  ;;  %v530_v18 = vsel %vm260_vm3, %v525_v17, 0 }
 0x4c3   :  { %757 = vmatpush3.bf16.msra.mxu0 %v530_v18 }
 0x4cb   :  { %v803_v19 = vpop.eup %802 }
 0x4cc   :  { %v464_v20 = vsel %vm230_vm2, %v803_v19, 0.0 }
 0x4cd   :  { %465 = vadd.xlane.f32.xlu1 %v464_v20 }
 0x4cf   :  { %v805_v21 = vpop.eup %804 }
 0x4d0   :  { %v467_v22 = vsel %vm230_vm2, %v805_v21, 0.0 }
 0x4d1   :  { %468 = vadd.xlane.f32.xlu1 %v467_v22 }
 0x4e2   :  { %476 = vrot.lane.b32.xlu1 %v969_v7, %s906_s11 }
 0x556   :  { %v466_v11 = vpop.xlane.xlu1 %465 }
 0x557   :  { %806 = vrcp.f32 %v466_v11 }
 0x55a   :  { %v469_v23 = vpop.xlane.xlu1 %468 }
 0x55b   :  { %808 = vrcp.f32 %v469_v23 }
 0x55e   :  { %v477_v24 = vpop.permute.xlu1 %476 }
 0x55f   :  { %v482_v25 = vsel %vm260_vm3, %v477_v24, 0 }
 0x560   :  { %751 = vmatpush3.bf16.msra.mxu1 %v482_v25 }
 0x561   :  { %762 = vmatprep.subr.bf16.mxu1 %v901_v0 }
 0x564   :  { %v807_v26 = vpop.eup %806 }
 0x565   :  { %v472_v27 = vmul.f32 %v807_v26, %v803_v19 }
 0x567   :  { %v474_v28 = vpack.c.bf16 %v472_v27, %v472_v27 }
 0x568   :  { %v809_v29 = vpop.eup %808 }
 0x569   :  { %753 = vmatmul.mubr.msk.bf16.vlgmr.msra.gmra.mxu1 %vm230_vm2, %v474_v28  ;;  %v473_v30 = vmul.f32 %v809_v29, %v805_v21 }
 0x56a   :  { %766 = vmatprep.mubr.msk.bf16.mxu1 %vm902_vm0, %v901_v0  ;;  %763 = vmatpush3.bf16.msra.mxu1 %v792_v31 }
 0x56b   :  { %v475_v7 = vpack.c.bf16 %v473_v30, %v473_v30  ;;  %764 = vmatprep.subr.bf16.mxu1 %v901_v0 }
 0x56d   :  { %759 = vmatmul.mubr.msk.bf16.vlgmr.msra.gmra.mxu0 %vm230_vm2, %v475_v7 }
 0x56e   :  { %765 = vmatpush3.bf16.msra.mxu1 %v793_v32 }
 0x629   :  { %v518_v33 = vpop.f32.mrf.mxu1 }
 0x62b   :  { %v754_v34 = vpop.f32.mrf.mxu1 }
 0x62d   :  { %v521_v35 = vpop.f32.mrf.mxu1  ;;  %v566_v36 = vpop.f32.mrf.mxu0 }
 0x62e   :  { %v785_v37 = vpack.i.bf16 %v566_v36, %v518_v33 }
 0x62f   :  { %v755_v38 = vpop.f32.mrf.mxu1  ;;  %v760_v39 = vpop.f32.mrf.mxu0 }
 0x630   :  { %786 = vrot.lane.b32.xlu1 %v785_v37, %s907_s12 }
 0x631   :  { %v569_v40 = vpop.f32.mrf.mxu0 }
 0x633   :  { %v761_v41 = vpop.f32.mrf.mxu0 }
 0x6a2   :  { %v787_v42 = vpop.permute.xlu1 %786 }
 0x6a3   :  { %v789_v43 = vunpack.i.h.bf16 %v787_v42  ;;  %v788_v44 = vunpack.i.l.bf16 %v787_v42 }
 0x6a5   :  { %v581_v45 = vsel %vm85_vm1, %v1021_v57, %v789_v43  ;;  %v580_v0 = vsel %vm85_vm1, %v1019_v54, %v788_v44 }
 0x6a6   :  { %v582_v46 = vpack.c.bf16 %v581_v45, %v580_v0 }
 0x6a8   :  { %767 = vmatmul.mubr.msk.bf16.vlgmr.msra.gmra.mxu1 %vm606_vm4, %v582_v46 }
 0x768   :  { %v644_v48 = vpop.f32.mrf.mxu1 }
 0x769   :  { %v645_v49 = vadd.f32 %v683_v47, %v644_v48 }
 0x76a   :  { %v768_v50 = vpop.f32.mrf.mxu1 }
 0x76b   :  { %651 = vst.msk [vmem:[#allocation8] sm:$0xff] %vm606_vm4, %v645_v49 }
 0x76c   :  { %v647_v51 = vpop.f32.mrf.mxu1 }
 0x76d   :  { %v648_v52 = vadd.f32 %v683_v47, %v647_v51 }
 0x76e   :  { %v769_v53 = vpop.f32.mrf.mxu1 }
 0x76f   :  { %652 = vst.msk [vmem:[#allocation8 + $0x8] sm:$0xff] %vm606_vm4, %v648_v52 }
 0x770   :  { %881 = shalt.err (!%p878_p5)
}
 0x771   :  { %s909_s18 = smov 128   ;;  %s910_s4 = smov 8  }
 0x772   :  { %664 = dma.vmem_to_hbm [thread:$0]  %s659_s16, 256, %s1052_s5, [#allocation4], %s909_s18, %s909_s18, %s910_s4  }
 0x773   :  { %894 = dma.done.wait [#allocation4], 256  }
 0x774   :  { %895 = vsyncadd [#allocation4], 4294967040 }
 0x775   :  { %668 = vsyncpa [#allocation3], 1 }
 0x776   :  { %669 = vsyncpa [#allocation6], 1 }
 0x777   :  { %670 = vsyncpa [#allocation4], 1 }

</bundles_post_ra>
